<compile_context>
chip_gen: v6e
topology: v6e:2x2x1
jax: 0.10.0
libtpu: 0.0.40
codegen_flags: <defaults>
</compile_context>

<pallas_src>
import functools

import jax
import jax.numpy as jnp
from jax.experimental import pallas as pl
from jax.experimental.pallas import tpu as pltpu


def _round_up(n, m):
    return (n + m - 1) // m * m


def _pad2(a, rows, cols):
    r, c = a.shape
    return jnp.pad(a, ((0, rows - r), (0, cols - c)))


# ---------------------------------------------------------------------------
# Fused kernel: the entire MLP in one body.
# refs layout: x_ref, w0, b0, w1, b1, ..., [mask_ref if training], o_ref
# ---------------------------------------------------------------------------
def _decoder_kernel(*refs, n_layers, training):
    x_ref = refs[0]
    o_ref = refs[-1]
    mask_ref = refs[-2] if training else None

    acc = x_ref[...]                                   # bf16 activations
    for i in range(n_layers):
        w = refs[1 + 2 * i][...]                       # bf16 (Din_p, Dout_p)
        b = refs[2 + 2 * i][...]                       # f32  (1, Dout_p)
        # bf16 MXU matmul, f32 accumulation; everything else stays f32.
        acc = jnp.dot(acc.astype(jnp.bfloat16), w,
                      preferred_element_type=jnp.float32) + b
        if i < n_layers - 1:
            acc = jnp.maximum(acc, 0.0)                # ReLU (hidden layers)
        else:
            if training:
                # Dropout(p=0.5): int8 mask holds {0, 2} = keep * 1/(1-p)
                acc = acc * mask_ref[...].astype(jnp.float32)
            acc = jax.nn.sigmoid(acc)                  # Sigmoid (last layer)
    o_ref[...] = acc.astype(o_ref.dtype)


# ---------------------------------------------------------------------------
# Decoder: parameter init + forward
# ---------------------------------------------------------------------------
def init_decoder_params(key, dims):
    """Deterministic init matching nn.Linear default: U(-1/sqrt(fan_in), +)."""
    params = []
    for i in range(len(dims) - 1):
        key, kw, kb = jax.random.split(key, 3)
        bound = 1.0 / (dims[i] ** 0.5)
        w = jax.random.uniform(kw, (dims[i], dims[i + 1]), jnp.float32,
                               -bound, bound)
        b = jax.random.uniform(kb, (dims[i + 1],), jnp.float32, -bound, bound)
        params.append((w, b))
    return params


def decoder_forward(params, x, *, training=False, dropout_keep=None,
                    dropout_key=None):
    """Forward pass of the Decoder MLP as a single fused Pallas kernel.

    params:        list of (w, b), w: [din, dout], b: [dout]
    x:             [batch, dims[0]]
    dropout_keep:  optional bool [batch, dims[-1]] keep-mask (training only);
                   generated from dropout_key if not supplied.
    """
    n_layers = len(params)
    B, D0 = x.shape
    orig_dtype = x.dtype
    dims = [D0] + [w.shape[1] for (w, _) in params]

    # Lane-dense feature padding: 128 for tiny dims, 256-aligned for wide dims
    # (v6e/v7x MXUs are 2x256^2; irrelevant and wasteful for the toy dims).
    dims_p = [_round_up(d, 128) if d <= 128 else _round_up(d, 256)
              for d in dims]

    if B > 128:
        # Batch tile: large tiles amortize per-grid-step overhead, but keep at
        # least 2 grid steps so v7x's 2 TensorCores both get work.
        bm = max(128, min(512, _round_up(max(B // 2, 1), 128)))
        B_p = _round_up(B, bm)
    else:
        bm = None                      # single gridless block
        B_p = _round_up(B, 32)         # 32-row pad is safe for f32/bf16/int8

    x_p = _pad2(x.astype(jnp.bfloat16), B_p, dims_p[0])

    flat = []
    for i, (w, b) in enumerate(params):
        flat.append(_pad2(w.astype(jnp.bfloat16), dims_p[i], dims_p[i + 1]))
        flat.append(_pad2(b.astype(jnp.float32).reshape(1, -1),
                          1, dims_p[i + 1]))

    inputs = [x_p] + flat
    if training:
        if dropout_keep is None:
            if dropout_key is None:
                dropout_key = jax.random.PRNGKey(0)
            dropout_keep = jax.random.bernoulli(dropout_key, 0.5,
                                                (B, dims[-1]))
        # int8 {0,2} keep-mask: 4x less HBM than an f32 mask.
        # TODO(synk): replace with in-kernel pltpu.prng_seed/prng_random_bits
        # (mixing pl.program_id(0) into the seed) to drop this input entirely.
        mask_i8 = (dropout_keep.astype(jnp.int8) * 2).astype(jnp.int8)
        inputs.append(_pad2(mask_i8, B_p, dims_p[-1]))

    kernel = functools.partial(_decoder_kernel, n_layers=n_layers,
                               training=training)
    # bf16 padded output halves writeback; sliced/cast back on the host.
    out_shape = jax.ShapeDtypeStruct((B_p, dims_p[-1]), jnp.bfloat16)

    if bm is None:
        # Small batch: whole problem is one full-array block, no grid.
        out_p = pl.pallas_call(kernel, out_shape=out_shape)(*inputs)
    else:
        # Large batch: tile the batch (M) axis; weights/bias stay resident as
        # full-array blocks; batch axis is "parallel" (megacore / 2-TC v7x).
        in_specs = [pl.BlockSpec((bm, dims_p[0]), lambda i: (i, 0))]
        for li in range(n_layers):
            in_specs.append(pl.BlockSpec((dims_p[li], dims_p[li + 1]),
                                         lambda i_: (0, 0)))
            in_specs.append(pl.BlockSpec((1, dims_p[li + 1]),
                                         lambda i_: (0, 0)))
        if training:
            in_specs.append(pl.BlockSpec((bm, dims_p[-1]), lambda i: (i, 0)))

        # Explicit VMEM budget: every block (even constant-index weights) is
        # double-buffered by the pipeline.
        resident = 2 * bm * dims_p[0] * 2                      # x tiles  (bf16)
        for li in range(n_layers):
            resident += 2 * dims_p[li] * dims_p[li + 1] * 2    # weights  (bf16)
            resident += 2 * 8 * dims_p[li + 1] * 4             # bias (f32, 8-row pad)
        resident += 2 * bm * dims_p[-1] * 2                    # out tiles (bf16)
        if training:
            resident += 2 * bm * dims_p[-1] * 1                # mask tiles (int8)
        acc_bytes = bm * max(dims_p) * 4                       # f32 accumulator
        vmem_limit = min(max(2 * (resident + acc_bytes) + (4 << 20), 16 << 20),
                         64 << 20)

        out_p = pl.pallas_call(
            kernel,
            out_shape=out_shape,
            grid=(B_p // bm,),
            in_specs=in_specs,
            out_specs=pl.BlockSpec((bm, dims_p[-1]), lambda i: (i, 0)),
            compiler_params=pltpu.CompilerParams(
                dimension_semantics=("parallel",),
                vmem_limit_bytes=vmem_limit),
        )(*inputs)

    return out_p[:B, :dims[-1]].astype(orig_dtype)


def decoder_ref(params, x, *, keep_mask=None):
    """Plain-JAX f32 reference. keep_mask (bool) emulates Dropout(p=0.5)."""
    n = len(params)
    for i, (w, b) in enumerate(params):
        y = x @ w + b
        if i < n - 1:
            x = jnp.maximum(y, 0.0)
        else:
            if keep_mask is not None:
                y = y * keep_mask.astype(y.dtype) * 2.0
            x = jax.nn.sigmoid(y)
    return x


if __name__ == "__main__":
    dims = [32, 64, 48, 16]     # Decoder(dims): 3 Linear layers
    batch = 8

    key = jax.random.PRNGKey(0)
    key, kx, kd, kxb = jax.random.split(key, 4)
    x = jax.random.normal(kx, (batch, dims[0]), jnp.float32)
    params = init_decoder_params(key, dims)

    # Tolerances relaxed vs. the pure-f32 version: matmuls are bf16-in /
    # f32-accumulate and the padded output is stored bf16.
    ATOL = 3e-2
    RTOL = 3e-2

    # --- eval mode (Dropout = identity), single-block (gridless) path -------
    out_eval = jax.block_until_ready(decoder_forward(params, x,
                                                     training=False))
    ref_eval = decoder_ref(params, x)
    assert out_eval.shape == (batch, dims[-1])
    assert jnp.allclose(out_eval, ref_eval, atol=ATOL, rtol=RTOL)

    # --- training mode (deterministic host-side int8 dropout mask) ----------
    keep = jax.random.bernoulli(kd, 0.5, (batch, dims[-1]))
    out_train = jax.block_until_ready(
        decoder_forward(params, x, training=True, dropout_keep=keep))
    ref_train = decoder_ref(params, x, keep_mask=keep)
    assert out_train.shape == (batch, dims[-1])
    assert jnp.allclose(out_train, ref_train, atol=ATOL, rtol=RTOL)
    assert bool(jnp.all(jnp.isfinite(out_train)))

    # --- larger batch exercises the batch-tiled, parallel-grid path ---------
    big_batch = 260
    xb = jax.random.normal(kxb, (big_batch, dims[0]), jnp.float32)
    out_big = jax.block_until_ready(decoder_forward(params, xb,
                                                    training=False))
    ref_big = decoder_ref(params, xb)
    assert out_big.shape == (big_batch, dims[-1])
    assert jnp.allclose(out_big, ref_big, atol=ATOL, rtol=RTOL)

    # --- training on the tiled path (mask rides the same parallel grid) -----
    keep_b = jax.random.bernoulli(kd, 0.5, (big_batch, dims[-1]))
    out_big_tr = jax.block_until_ready(
        decoder_forward(params, xb, training=True, dropout_keep=keep_b))
    ref_big_tr = decoder_ref(params, xb, keep_mask=keep_b)
    assert jnp.allclose(out_big_tr, ref_big_tr, atol=ATOL, rtol=RTOL)

    print("KERNEL_OK")
</pallas_src>

<mosaic_0001>
module attributes {stable_mosaic.version = 11 : i64} {
  func.func @_decoder_kernel(%arg0: memref<32x128xbf16, #tpu.memory_space<vmem>>, %arg1: memref<128x128xbf16, #tpu.memory_space<vmem>>, %arg2: memref<1x128xf32, #tpu.memory_space<vmem>>, %arg3: memref<128x128xbf16, #tpu.memory_space<vmem>>, %arg4: memref<1x128xf32, #tpu.memory_space<vmem>>, %arg5: memref<128x128xbf16, #tpu.memory_space<vmem>>, %arg6: memref<1x128xf32, #tpu.memory_space<vmem>>, %arg7: memref<32x128xbf16, #tpu.memory_space<vmem>>) attributes {dimension_semantics = [], scalar_prefetch = 0 : i64, scratch_operands = 0 : i64, tpu.core_type = #tpu.core_type<tc>} {
    %c0 = arith.constant 0 : index
    %c0_0 = arith.constant 0 : index
    %0 = vector.load %arg0[%c0, %c0_0] : memref<32x128xbf16, #tpu.memory_space<vmem>>, vector<32x128xbf16>
    %c0_1 = arith.constant 0 : index
    %c0_2 = arith.constant 0 : index
    %1 = vector.load %arg1[%c0_1, %c0_2] : memref<128x128xbf16, #tpu.memory_space<vmem>>, vector<128x128xbf16>
    %c0_3 = arith.constant 0 : index
    %c0_4 = arith.constant 0 : index
    %2 = vector.load %arg2[%c0_3, %c0_4] : memref<1x128xf32, #tpu.memory_space<vmem>>, vector<1x128xf32>
    %cst = arith.constant dense<0.000000e+00> : vector<32x128xf32>
    %3 = tpu.matmul %0, %1, %cst {dimension_numbers = #tpu.dot_dimension_numbers<[1], [0], [0], [1], [0, 0, 1, 1], [], []>} : vector<32x128xbf16>, vector<128x128xbf16>, vector<32x128xf32> -> vector<32x128xf32>
    %4 = vector.broadcast %2 : vector<1x128xf32> to vector<32x128xf32>
    %5 = arith.addf %3, %4 : vector<32x128xf32>
    %cst_5 = arith.constant 0.000000e+00 : f32
    %6 = vector.broadcast %cst_5 : f32 to vector<32x128xf32>
    %7 = arith.maximumf %5, %6 : vector<32x128xf32>
    %c0_6 = arith.constant 0 : index
    %c0_7 = arith.constant 0 : index
    %8 = vector.load %arg3[%c0_6, %c0_7] : memref<128x128xbf16, #tpu.memory_space<vmem>>, vector<128x128xbf16>
    %c0_8 = arith.constant 0 : index
    %c0_9 = arith.constant 0 : index
    %9 = vector.load %arg4[%c0_8, %c0_9] : memref<1x128xf32, #tpu.memory_space<vmem>>, vector<1x128xf32>
    %10 = arith.truncf %7 : vector<32x128xf32> to vector<32x128xbf16>
    %cst_10 = arith.constant dense<0.000000e+00> : vector<32x128xf32>
    %11 = tpu.matmul %10, %8, %cst_10 {dimension_numbers = #tpu.dot_dimension_numbers<[1], [0], [0], [1], [0, 0, 1, 1], [], []>} : vector<32x128xbf16>, vector<128x128xbf16>, vector<32x128xf32> -> vector<32x128xf32>
    %12 = vector.broadcast %9 : vector<1x128xf32> to vector<32x128xf32>
    %13 = arith.addf %11, %12 : vector<32x128xf32>
    %cst_11 = arith.constant 0.000000e+00 : f32
    %14 = vector.broadcast %cst_11 : f32 to vector<32x128xf32>
    %15 = arith.maximumf %13, %14 : vector<32x128xf32>
    %c0_12 = arith.constant 0 : index
    %c0_13 = arith.constant 0 : index
    %16 = vector.load %arg5[%c0_12, %c0_13] : memref<128x128xbf16, #tpu.memory_space<vmem>>, vector<128x128xbf16>
    %c0_14 = arith.constant 0 : index
    %c0_15 = arith.constant 0 : index
    %17 = vector.load %arg6[%c0_14, %c0_15] : memref<1x128xf32, #tpu.memory_space<vmem>>, vector<1x128xf32>
    %18 = arith.truncf %15 : vector<32x128xf32> to vector<32x128xbf16>
    %cst_16 = arith.constant dense<0.000000e+00> : vector<32x128xf32>
    %19 = tpu.matmul %18, %16, %cst_16 {dimension_numbers = #tpu.dot_dimension_numbers<[1], [0], [0], [1], [0, 0, 1, 1], [], []>} : vector<32x128xbf16>, vector<128x128xbf16>, vector<32x128xf32> -> vector<32x128xf32>
    %20 = vector.broadcast %17 : vector<1x128xf32> to vector<32x128xf32>
    %21 = arith.addf %19, %20 : vector<32x128xf32>
    %22 = arith.negf %21 : vector<32x128xf32>
    %23 = math.exp %22 : vector<32x128xf32>
    %cst_17 = arith.constant 1.000000e+00 : f32
    %24 = vector.broadcast %cst_17 : f32 to vector<32x128xf32>
    %25 = arith.addf %24, %23 : vector<32x128xf32>
    %26 = arith.divf %24, %25 : vector<32x128xf32>
    %27 = arith.truncf %26 : vector<32x128xf32> to vector<32x128xbf16>
    %c0_18 = arith.constant 0 : index
    %c0_19 = arith.constant 0 : index
    %28 = vector.load %arg7[%c0_18, %c0_19] : memref<32x128xbf16, #tpu.memory_space<vmem>>, vector<32x128xbf16>
    tpu.vector_store %arg7[%c0_18, %c0_19], %27 {strides = array<i32>} : memref<32x128xbf16, #tpu.memory_space<vmem>>, vector<32x128xbf16>,
    return
  }
}

</mosaic_0001>

<bundles_post_ra>
// kernel: tpu_custom_call.1
= control target key start
LH: loop header
LB: loop body
LE: loop exit
PB: predicated region body
PF: predicated region fallthrough
CT: control target
= control target key end

     0   :  { %12 = vsyncpa [#allocation3], 0  ;;  %s919_s0 = inlined_call_operand.hbm [shape: bf16[32,128], index: 0, kind: input, shape index: {}]   ;;  %s920_s1 = inlined_call_operand.hbm [shape: bf16[128,128], index: 1, kind: input, shape index: {}]   ;;  %s921_s2 = inlined_call_operand.vmem [shape: f32[1,128], index: 2, kind: input, shape index: {}]   ;;  %s922_s3 = inlined_call_operand.hbm [shape: bf16[128,128], index: 3, kind: input, shape index: {}]   ;;  %s923_s4 = inlined_call_operand.vmem [shape: f32[1,128], index: 4, kind: input, shape index: {}]   ;;  %s924_s5 = inlined_call_operand.hbm [shape: bf16[128,128], index: 5, kind: input, shape index: {}]   ;;  %s925_s6 = inlined_call_operand.vmem [shape: f32[1,128], index: 6, kind: input, shape index: {}]   ;;  %s926_s7 = inlined_call_operand.hbm [shape: bf16[32,128], index: 7, kind: output, shape index: {}]  }
   0x1   :  { %13 = vsyncpa [#allocation6], 0 }
   0x2   :  { %14 = vsyncpa [#allocation9], 0 }
   0x3   :  { %15 = vsyncpa [#allocation4], 0  ;;  %s833_s24 = smov [#allocation5]   ;;  %s834_s26 = smov [#allocation2]  }
   0x4   :  { %s33_s25 = sshll.u32 %s833_s24, 4  ;;  %s21_s27 = sshll.u32 %s834_s26, 4  ;;  %s34_s25 = int_to_ptr.vmem [resolvable:$true] %s33_s25  ;;  %s22_s27 = int_to_ptr.vmem [resolvable:$true] %s21_s27 }
   0x5   :  { %s733_s28 = scalar_lea.vmem %s34_s25, 1024  ;;  %p738_p1 = scmp.lt.s32.totalorder %s34_s25, %s34_s25 }
   0x6   :  { %p734_p0 = scmp.ne.s32.totalorder %s34_s25, %s733_s28  ;;  %p739_p2 = scmp.lt.s32.totalorder %s733_s28, %s733_s28 }
   0x8   :  { %p740_p3 = por %p739_p2, %p738_p1 }
   0xa   :  { %p741_p4 = pnand %p740_p3, %p734_p0 }
   0xc   :  { %744 = shalt.err (!%p741_p4)
}
   0xd   :  { %s835_s29 = smov 64   ;;  %s836_s30 = smov 4  }
   0xe   :  { %39 = dma.hbm_to_vmem [thread:$0]  %s920_s1, 1024, %s34_s25, [#allocation6], %s835_s29, %s835_s29, %s836_s30  }
   0xf   :  { %s753_s10 = scalar_lea.vmem %s22_s27, 256  ;;  %p758_p6 = scmp.lt.s32.totalorder %s22_s27, %s22_s27 }
  0x10   :  { %p754_p5 = scmp.ne.s32.totalorder %s22_s27, %s753_s10  ;;  %p759_p7 = scmp.lt.s32.totalorder %s753_s10, %s753_s10 }
  0x12   :  { %p760_p8 = por %p759_p7, %p758_p6 }
  0x14   :  { %p761_p9 = pnand %p760_p8, %p754_p5 }
  0x16   :  { %764 = shalt.err (!%p761_p9)
}
  0x17   :  { %27 = dma.hbm_to_vmem [thread:$0]  %s919_s0, 256, %s22_s27, [#allocation3], %s835_s29, %s835_s29, %s836_s30  }
  0x18   :  { %s837_s13 = smov [#allocation7]   ;;  %s838_s15 = smov [#allocation8]  }
  0x19   :  { %s47_s14 = sshll.u32 %s837_s13, 4  ;;  %s61_s16 = sshll.u32 %s838_s15, 4  ;;  %s48_s14 = int_to_ptr.vmem [resolvable:$true] %s47_s14  ;;  %s62_s16 = int_to_ptr.vmem [resolvable:$true] %s61_s16 }
  0x1a   :  { %s773_s1 = scalar_lea.vmem %s48_s14, 1024  ;;  %p778_p11 = scmp.lt.s32.totalorder %s48_s14, %s48_s14 }
  0x1b   :  { %p774_p10 = scmp.ne.s32.totalorder %s48_s14, %s773_s1  ;;  %p779_p12 = scmp.lt.s32.totalorder %s773_s1, %s773_s1 }
  0x1d   :  { %p780_p13 = por %p779_p12, %p778_p11 }
  0x1f   :  { %p781_p0 = pnand %p780_p13, %p774_p10 }
  0x21   :  { %784 = shalt.err (!%p781_p0)
}
  0x22   :  { %53 = dma.hbm_to_vmem [thread:$0]  %s922_s3, 1024, %s48_s14, [#allocation6], %s835_s29, %s835_s29, %s836_s30  }
  0x23   :  { %s793_s0 = scalar_lea.vmem %s62_s16, 1024  ;;  %p798_p2 = scmp.lt.s32.totalorder %s62_s16, %s62_s16 }
  0x24   :  { %p794_p1 = scmp.ne.s32.totalorder %s62_s16, %s793_s0  ;;  %p799_p3 = scmp.lt.s32.totalorder %s793_s0, %s793_s0 }
  0x26   :  { %p800_p4 = por %p799_p3, %p798_p2 }
  0x28   :  { %p801_p5 = pnand %p800_p4, %p794_p1 }
  0x2a   :  { %804 = shalt.err (!%p801_p5)
}
  0x2b   :  { %67 = dma.hbm_to_vmem [thread:$0]  %s924_s5, 1024, %s62_s16, [#allocation9], %s835_s29, %s835_s29, %s836_s30  }
  0x2c   :  { %825 = dma.done.wait [#allocation3], 256  }
  0x2d   :  { %826 = vsyncadd [#allocation3], 4294967040 }
  0x2e   :  { %827 = dma.done.wait [#allocation6], 2048  }
  0x2f   :  { %828 = vsyncadd [#allocation6], 4294965248 }
  0x30   :  { %829 = dma.done.wait [#allocation9], 1024  }
  0x31   :  { %830 = vsyncadd [#allocation9], 4294966272  ;;  %v683_v0 = vld [vmem:[#allocation5 + $0x38] sm:$0xff]   ;;  %v684_v1 = vld [vmem:[#allocation5 + $0x30] sm:$0xff]  }
  0x32   :  { %616 = vmatprep.subr.bf16.mxu0 %v683_v0  ;;  %v685_v2 = vld [vmem:[#allocation5 + $0x28] sm:$0xff]   ;;  %v686_v3 = vld [vmem:[#allocation5 + $0x20] sm:$0xff]   ;;  %v691_v4 = vld [vmem:[#allocation2] sm:$0xff]  }
  0x33   :  { %617 = vmatpush3.bf16.msra.mxu0 %v683_v0  ;;  %632 = vmatprep.mubr.bf16.mxu0 %v691_v4  ;;  %v693_v5 = vld [vmem:[#allocation7 + $0x38] sm:$0xff]   ;;  %v694_v6 = vld [vmem:[#allocation7 + $0x30] sm:$0xff]   ;;  %v695_v9 = vld [vmem:[#allocation7 + $0x28] sm:$0xff]  }
  0x34   :  { %618 = vmatprep.subr.bf16.mxu0 %v684_v1  ;;  %v687_v7 = vld [vmem:[#allocation5 + $0x18] sm:$0xff]   ;;  %636 = vmatprep.subr.bf16.mxu1 %v693_v5  ;;  %v688_v8 = vld [vmem:[#allocation5 + $0x10] sm:$0xff]   ;;  %v696_v10 = vld [vmem:[#allocation7 + $0x20] sm:$0xff]  }
  0x35   :  { %637 = vmatpush3.bf16.msra.mxu1 %v693_v5  ;;  %v689_v11 = vld [vmem:[#allocation5 + $0x8] sm:$0xff]   ;;  %v697_v12 = vld [vmem:[#allocation7 + $0x18] sm:$0xff]   ;;  %v690_v13 = vld [vmem:[#allocation5] sm:$0xff]  }
  0x36   :  { %638 = vmatprep.subr.bf16.mxu1 %v694_v6  ;;  %v692_v14 = vld [vmem:[#allocation2 + $0x8] sm:$0xff]   ;;  %v698_v15 = vld [vmem:[#allocation7 + $0x10] sm:$0xff]   ;;  %v699_v16 = vld [vmem:[#allocation7 + $0x8] sm:$0xff]  }
  0x37   :  { %619 = vmatpush3.bf16.msra.mxu0 %v684_v1  ;;  %v700_v17 = vld [vmem:[#allocation7] sm:$0xff]   ;;  %v701_v18 = vld [vmem:[#allocation8 + $0x38] sm:$0xff]   ;;  %v702_v19 = vld [vmem:[#allocation8 + $0x30] sm:$0xff]  }
  0x38   :  { %620 = vmatprep.subr.bf16.mxu0 %v685_v2  ;;  %v703_v20 = vld [vmem:[#allocation8 + $0x28] sm:$0xff]   ;;  %v704_v21 = vld [vmem:[#allocation8 + $0x20] sm:$0xff]   ;;  %v705_v22 = vld [vmem:[#allocation8 + $0x18] sm:$0xff]  }
  0x39   :  { %639 = vmatpush3.bf16.msra.mxu1 %v694_v6  ;;  %v534_v25 = vld [vmem:[%s921_s2] ss:$0 sm:$0xff]  ;;  %v707_v39 = vld [vmem:[#allocation8 + $0x8] sm:$0xff]   ;;  %v708_v40 = vld [vmem:[#allocation8] sm:$0xff]  }
  0x3a   :  { %640 = vmatprep.subr.bf16.mxu1 %v695_v9  ;;  %v706_v38 = vld [vmem:[#allocation8 + $0x10] sm:$0xff]  }
  0x3b   :  { %621 = vmatpush3.bf16.msra.mxu0 %v685_v2  ;;  %v545_v43 = vld [vmem:[%s923_s4] ss:$0 sm:$0xff]  ;;  %s839_s4 = smov [#allocation10]  }
  0x3c   :  { %622 = vmatprep.subr.bf16.mxu0 %v686_v3  ;;  %v554_v56 = vld [vmem:[%s925_s6] ss:$0 sm:$0xff]  ;;  %s520_s6 = sshll.u32 %s839_s4, 4  ;;  %s521_s6 = int_to_ptr.vmem [resolvable:$true] %s520_s6 }
  0x3d   :  { %641 = vmatpush3.bf16.msra.mxu1 %v695_v9  ;;  %s805_s24 = scalar_lea.vmem %s521_s6, 256  ;;  %p810_p7 = scmp.lt.s32.totalorder %s521_s6, %s521_s6 }
  0x3e   :  { %642 = vmatprep.subr.bf16.mxu1 %v696_v10  ;;  %p806_p6 = scmp.ne.s32.totalorder %s521_s6, %s805_s24  ;;  %p811_p8 = scmp.lt.s32.totalorder %s805_s24, %s805_s24 }
  0x3f   :  { %623 = vmatpush3.bf16.msra.mxu0 %v686_v3 }
  0x40   :  { %624 = vmatprep.subr.bf16.mxu0 %v687_v7  ;;  %p812_p9 = por %p811_p8, %p810_p7 }
  0x41   :  { %643 = vmatpush3.bf16.msra.mxu1 %v696_v10 }
  0x42   :  { %644 = vmatprep.subr.bf16.mxu1 %v697_v12  ;;  %p813_p10 = pnand %p812_p9, %p806_p6 }
  0x43   :  { %625 = vmatpush3.bf16.msra.mxu0 %v687_v7 }
  0x44   :  { %626 = vmatprep.subr.bf16.mxu0 %v688_v8 }
  0x45   :  { %645 = vmatpush3.bf16.msra.mxu1 %v697_v12 }
  0x46   :  { %646 = vmatprep.subr.bf16.mxu1 %v698_v15 }
  0x47   :  { %627 = vmatpush3.bf16.msra.mxu0 %v688_v8 }
  0x48   :  { %628 = vmatprep.subr.bf16.mxu0 %v689_v11 }
  0x49   :  { %647 = vmatpush3.bf16.msra.mxu1 %v698_v15 }
  0x4a   :  { %648 = vmatprep.subr.bf16.mxu1 %v699_v16 }
  0x4b   :  { %629 = vmatpush3.bf16.msra.mxu0 %v689_v11 }
  0x4c   :  { %630 = vmatprep.subr.bf16.mxu0 %v690_v13 }
  0x4d   :  { %649 = vmatpush3.bf16.msra.mxu1 %v699_v16 }
  0x4e   :  { %650 = vmatprep.subr.bf16.mxu1 %v700_v17 }
  0x4f   :  { %631 = vmatpush3.bf16.msra.mxu0 %v690_v13 }
  0x50   :  { %656 = vmatprep.subr.bf16.mxu0 %v701_v18 }
  0x51   :  { %651 = vmatpush3.bf16.msra.mxu1 %v700_v17 }
  0x52   :  { %633 = vmatmul.mubr.bf16.vlgmr.msra.gmra.mxu0 %v692_v14 }
  0x53   :  { %657 = vmatpush3.bf16.msra.mxu0 %v701_v18 }
  0x54   :  { %658 = vmatprep.subr.bf16.mxu0 %v702_v19 }
  0x57   :  { %659 = vmatpush3.bf16.msra.mxu0 %v702_v19 }
  0x58   :  { %660 = vmatprep.subr.bf16.mxu0 %v703_v20 }
  0x5b   :  { %661 = vmatpush3.bf16.msra.mxu0 %v703_v20 }
  0x5c   :  { %662 = vmatprep.subr.bf16.mxu0 %v704_v21 }
  0x5f   :  { %663 = vmatpush3.bf16.msra.mxu0 %v704_v21 }
  0x60   :  { %664 = vmatprep.subr.bf16.mxu0 %v705_v22 }
  0x63   :  { %665 = vmatpush3.bf16.msra.mxu0 %v705_v22 }
  0x64   :  { %666 = vmatprep.subr.bf16.mxu0 %v706_v38 }
  0x67   :  { %667 = vmatpush3.bf16.msra.mxu0 %v706_v38 }
  0x68   :  { %668 = vmatprep.subr.bf16.mxu0 %v707_v39 }
  0x6b   :  { %669 = vmatpush3.bf16.msra.mxu0 %v707_v39 }
  0x6c   :  { %670 = vmatprep.subr.bf16.mxu0 %v708_v40 }
  0x6f   :  { %671 = vmatpush3.bf16.msra.mxu0 %v708_v40 }
 0x112   :  { %v634_v23 = vpop.f32.mrf.mxu0 }
 0x113   :  { %v213_v29 = vadd.f32 %v634_v23, %v534_v25 }
 0x114   :  { %v204_v24 = vpop.f32.mrf.mxu0 }
 0x115   :  { %v205_v27 = vadd.f32 %v534_v25, %v204_v24  ;;  %v221_v35 = vmax.f32 %v213_v29, 0.0 }
 0x116   :  { %v635_v26 = vpop.f32.mrf.mxu0 }
 0x117   :  { %v216_v28 = vadd.f32 %v635_v26, %v534_v25  ;;  %v219_v33 = vmax.f32 %v205_v27, 0.0 }
 0x118   :  { %v207_v30 = vpop.f32.mrf.mxu0 }
 0x119   :  { %v208_v31 = vadd.f32 %v534_v25, %v207_v30  ;;  %v222_v32 = vmax.f32 %v216_v28, 0.0 }
 0x11b   :  { %v220_v34 = vmax.f32 %v208_v31, 0.0  ;;  %v241_v37 = vpack.c.bf16 %v222_v32, %v221_v35 }
 0x11d   :  { %v240_v36 = vpack.c.bf16 %v220_v34, %v219_v33 }
 0x11f   :  { %652 = vmatprep.mubr.bf16.mxu1 %v240_v36 }
 0x120   :  { %653 = vmatmul.mubr.bf16.vlgmr.msra.gmra.mxu1 %v241_v37 }
 0x1e0   :  { %v654_v41 = vpop.f32.mrf.mxu1 }
 0x1e1   :  { %v339_v47 = vadd.f32 %v654_v41, %v545_v43 }
 0x1e2   :  { %v330_v42 = vpop.f32.mrf.mxu1 }
 0x1e3   :  { %v331_v45 = vadd.f32 %v545_v43, %v330_v42  ;;  %v347_v53 = vmax.f32 %v339_v47, 0.0 }
 0x1e4   :  { %v655_v44 = vpop.f32.mrf.mxu1 }
 0x1e5   :  { %v342_v46 = vadd.f32 %v655_v44, %v545_v43  ;;  %v345_v51 = vmax.f32 %v331_v45, 0.0 }
 0x1e6   :  { %v333_v48 = vpop.f32.mrf.mxu1 }
 0x1e7   :  { %v334_v49 = vadd.f32 %v545_v43, %v333_v48  ;;  %v348_v50 = vmax.f32 %v342_v46, 0.0 }
 0x1e9   :  { %v346_v52 = vmax.f32 %v334_v49, 0.0  ;;  %v367_v55 = vpack.c.bf16 %v348_v50, %v347_v53 }
 0x1eb   :  { %v366_v54 = vpack.c.bf16 %v346_v52, %v345_v51 }
 0x1ed   :  { %672 = vmatprep.mubr.bf16.mxu0 %v366_v54 }
 0x1ee   :  { %673 = vmatmul.mubr.bf16.vlgmr.msra.gmra.mxu0 %v367_v55 }
 0x2ae   :  { %v674_v57 = vpop.f32.mrf.mxu0 }
 0x2af   :  { %v465_v58 = vadd.f32 %v674_v57, %v554_v56 }
 0x2b0   :  { %v456_v59 = vpop.f32.mrf.mxu0 }
 0x2b1   :  { %v565_v60 = vmul.f32 -1.442695, %v465_v58  ;;  %v457_v61 = vadd.f32 %v554_v56, %v456_v59 }
 0x2b2   :  { %v675_v62 = vpop.f32.mrf.mxu0 }
 0x2b3   :  { %709 = vpow2.f32 %v565_v60  ;;  %v563_v63 = vmul.f32 -1.442695, %v457_v61  ;;  %v468_v0 = vadd.f32 %v675_v62, %v554_v56 }
 0x2b4   :  { %v459_v1 = vpop.f32.mrf.mxu0 }
 0x2b5   :  { %711 = vpow2.f32 %v563_v63  ;;  %v566_v2 = vmul.f32 -1.442695, %v468_v0  ;;  %v460_v3 = vadd.f32 %v554_v56, %v459_v1 }
 0x2b7   :  { %713 = vpow2.f32 %v566_v2  ;;  %v564_v4 = vmul.f32 -1.442695, %v460_v3 }
 0x2b9   :  { %715 = vpow2.f32 %v564_v4 }
 0x2c0   :  { %v710_v5 = vpop.eup %709 }
 0x2c1   :  { %v485_v7 = vadd.f32 1.0, %v710_v5 }
 0x2c2   :  { %v712_v6 = vpop.eup %711 }
 0x2c3   :  { %v483_v9 = vadd.f32 1.0, %v712_v6  ;;  %717 = vrcp.f32 %v485_v7 }
 0x2c4   :  { %v714_v8 = vpop.eup %713 }
 0x2c5   :  { %v486_v10 = vadd.f32 1.0, %v714_v8 }
 0x2c6   :  { %v716_v11 = vpop.eup %715 }
 0x2c7   :  { %719 = vrcp.f32 %v486_v10  ;;  %v484_v12 = vadd.f32 1.0, %v716_v11 }
 0x2c8   :  { %721 = vrcp.f32 %v483_v9 }
 0x2c9   :  { %723 = vrcp.f32 %v484_v12 }
 0x2d0   :  { %v718_v13 = vpop.eup %717 }
 0x2d4   :  { %v720_v14 = vpop.eup %719 }
 0x2d5   :  { %v722_v15 = vpop.eup %721  ;;  %v583_v16 = vpack.c.bf16 %v720_v14, %v718_v13 }
 0x2d6   :  { %v724_v17 = vpop.eup %723 }
 0x2d7   :  { %v578_v18 = vpack.c.bf16 %v724_v17, %v722_v15  ;;  %585 = vst [vmem:[#allocation10 + $0x8] sm:$0xff] %v583_v16  }
 0x2d9   :  { %579 = vst [vmem:[#allocation10] sm:$0xff] %v578_v18  }
 0x2da   :  { %816 = shalt.err (!%p813_p10)
}
 0x2db   :  { %526 = dma.vmem_to_hbm [thread:$0]  %s521_s6, 256, %s926_s7, [#allocation4], %s835_s29, %s835_s29, %s836_s30  }
 0x2dc   :  { %831 = dma.done.wait [#allocation4], 256  }
 0x2dd   :  { %832 = vsyncadd [#allocation4], 4294967040 }
 0x2de   :  { %530 = vsyncpa [#allocation3], 1 }
 0x2df   :  { %531 = vsyncpa [#allocation6], 1 }
 0x2e0   :  { %532 = vsyncpa [#allocation9], 1 }
 0x2e1   :  { %533 = vsyncpa [#allocation4], 1 }

</bundles_post_ra>
